<compile_context>
chip_gen: v7x
topology: tpu7x:2x2x1
jax: 0.10.0
libtpu: 0.0.40
codegen_flags: <defaults>
</compile_context>

<pallas_src>
import math
import functools

import jax
import jax.numpy as jnp
from jax import lax
from jax.experimental import pallas as pl
from jax.experimental.pallas import tpu as pltpu


_LN_EPS = 1e-5


def _layer_norm(v, scale, shift):
    # PyTorch LayerNorm: population variance (unbiased=False), eps=1e-5.
    mean = jnp.mean(v, axis=-1, keepdims=True)
    var = jnp.mean((v - mean) ** 2, axis=-1, keepdims=True)
    return (v - mean) * lax.rsqrt(var + _LN_EPS) * scale[None, :] + shift[None, :]


def _gelu_tanh(h):
    # tanh-approximation GELU (as in the GPT-from-scratch FeedForward).
    return 0.5 * h * (1.0 + jnp.tanh(jnp.sqrt(2.0 / jnp.pi) * (h + 0.044715 * h * h * h)))


# --------------------------------------------------------------------------
# Kernel 1: pre-LN + QKV projections (grid axis j selects q / k / v weight;
#           q weights are pre-scaled by 1/sqrt(hd)).  LN(x) is computed once
#           per token tile (at j == 0) and cached in VMEM scratch.
# --------------------------------------------------------------------------
def _qkv_kernel(x_ref, ln_s_ref, ln_b_ref, w_ref, b_ref,
                q_ref, k_ref, v_ref, xn_scr):
    j = pl.program_id(2)

    @pl.when(j == 0)
    def _ln():
        x = x_ref[0].astype(jnp.float32)                   # (Tt, D)
        xn_scr[...] = _layer_norm(x, ln_s_ref[0], ln_b_ref[0])

    proj = (jnp.dot(xn_scr[...].astype(w_ref.dtype), w_ref[0],
                    preferred_element_type=jnp.float32)
            + b_ref[0]).astype(q_ref.dtype)                # (Tt, D)

    @pl.when(j == 0)
    def _q():
        q_ref[0] = proj

    @pl.when(j == 1)
    def _k():
        k_ref[0] = proj

    @pl.when(j == 2)
    def _v():
        v_ref[0] = proj


# --------------------------------------------------------------------------
# Kernel 2: flash attention (online softmax over KV tiles) + out proj + residual
# --------------------------------------------------------------------------
def _flash_attn_kernel(q_ref, k_ref, v_ref, x_ref, wo_ref, bo_ref,
                       o_ref, m_scr, l_scr, acc_scr, *, num_heads):
    qi = pl.program_id(1)
    ki = pl.program_id(2)
    t_q, d_model = acc_scr.shape
    t_k = k_ref.shape[1]
    hd = d_model // num_heads

    @pl.when(ki == 0)
    def _init():
        m_scr[...] = jnp.full_like(m_scr, -jnp.inf)
        l_scr[...] = jnp.zeros_like(l_scr)
        acc_scr[...] = jnp.zeros_like(acc_scr)

    def step(masked):
        q = q_ref[0]            # (t_q, D), q pre-scaled by 1/sqrt(hd)
        k = k_ref[0]            # (t_k, D)
        v = v_ref[0]
        m_prev = m_scr[...]     # (t_q, H)
        l_prev = l_scr[...]

        if masked:
            # Causal mask only exists on the diagonal tile; hoisted out of the
            # head loop.
            q_pos = qi * t_q + lax.broadcasted_iota(jnp.int32, (t_q, t_k), 0)
            k_pos = ki * t_k + lax.broadcasted_iota(jnp.int32, (t_q, t_k), 1)
            causal = k_pos <= q_pos

        m_cols, l_cols, alpha_cols, pv_blocks = [], [], [], []
        # Heads as contiguous lane slices of (T, D): no head split/merge
        # transposes; contributions are collected and stored lane-dense below.
        for h in range(num_heads):
            sl = slice(h * hd, (h + 1) * hd)
            s = lax.dot_general(q[:, sl], k[:, sl],
                                (((1,), (1,)), ((), ())),
                                preferred_element_type=jnp.float32)   # (t_q, t_k)
            if masked:
                s = jnp.where(causal, s, -jnp.inf)
            m_p = m_prev[:, h:h + 1]
            m_n = jnp.maximum(m_p, jnp.max(s, axis=-1, keepdims=True))
            alpha = jnp.exp(m_p - m_n)
            p = jnp.exp(s - m_n)
            l_n = alpha * l_prev[:, h:h + 1] + jnp.sum(p, axis=-1, keepdims=True)
            pv = jnp.dot(p.astype(v.dtype), v[:, sl],
                         preferred_element_type=jnp.float32)          # (t_q, hd)
            m_cols.append(m_n)
            l_cols.append(l_n)
            alpha_cols.append(jnp.broadcast_to(alpha, (t_q, hd)))
            pv_blocks.append(pv)

        # Lane-dense scratch updates: one store each for m / l, one full-width
        # RMW for the context accumulator.
        m_scr[...] = jnp.concatenate(m_cols, axis=1)
        l_scr[...] = jnp.concatenate(l_cols, axis=1)
        alpha_full = jnp.concatenate(alpha_cols, axis=1)              # (t_q, D)
        acc_scr[...] = alpha_full * acc_scr[...] + jnp.concatenate(pv_blocks, axis=1)

    @pl.when(ki == qi)          # diagonal tile: needs the causal mask
    def _diag():
        step(True)

    @pl.when(ki < qi)           # fully-visible tiles: no mask work
    def _off_diag():
        step(False)

    # ki == qi is the last KV tile that contributes to this query tile
    # (tiles with ki > qi are fully masked -> compute and DMA both skipped).
    @pl.when(ki == qi)
    def _finalize():
        inv_l = pl.reciprocal(l_scr[...], approx=True)                # (t_q, H), EUP slot
        inv_full = jnp.concatenate(
            [jnp.broadcast_to(inv_l[:, h:h + 1], (t_q, hd)) for h in range(num_heads)],
            axis=1)                                                   # (t_q, D)
        ctx = acc_scr[...] * inv_full
        attn_out = jnp.dot(ctx.astype(wo_ref.dtype), wo_ref[...],
                           preferred_element_type=jnp.float32) + bo_ref[0]
        o_ref[0] = (x_ref[0].astype(jnp.float32) + attn_out).astype(o_ref.dtype)


# --------------------------------------------------------------------------
# Kernel 3: pre-LN + FeedForward (Linear -> tanh-GELU -> Linear) + residual,
#           tiled over the hidden dimension Dff with a VMEM f32 accumulator.
# --------------------------------------------------------------------------
def _ffn_kernel(x_ref, ln_s_ref, ln_b_ref, w1_ref, b1_ref, w2_ref, b2_ref,
                o_ref, xn_scr, acc_scr):
    j = pl.program_id(2)

    @pl.when(j == 0)
    def _init():
        x = x_ref[0].astype(jnp.float32)                   # (Tt, D)
        xn_scr[...] = _layer_norm(x, ln_s_ref[0], ln_b_ref[0])
        acc_scr[...] = jnp.zeros_like(acc_scr)

    h = jnp.dot(xn_scr[...].astype(w1_ref.dtype), w1_ref[...],
                preferred_element_type=jnp.float32) + b1_ref[0]       # (Tt, dff_tile)
    h = _gelu_tanh(h)
    acc_scr[...] += jnp.dot(h.astype(w2_ref.dtype), w2_ref[...],
                            preferred_element_type=jnp.float32)

    @pl.when(j == pl.num_programs(2) - 1)
    def _finalize():
        o_ref[0] = (x_ref[0].astype(jnp.float32) + acc_scr[...] + b2_ref[0]
                    ).astype(o_ref.dtype)


# --------------------------------------------------------------------------
# Wrapper
# --------------------------------------------------------------------------
def _vmem_capacity_bytes():
    try:
        info = pltpu.get_tpu_info()
        for attr in ("vmem_capacity_bytes", "vmem_size_bytes", "vmem_bytes"):
            v = getattr(info, attr, None)
            if v:
                return int(v)
    except Exception:
        pass
    return 128 * 1024 * 1024


def _pick_t_tile(T, small_vmem):
    prefs = (256, 512, 128) if small_vmem else (512, 256, 128)
    for cand in prefs:
        if T % cand == 0:
            return cand
    return T


def _pick_dff_tile(Dff, cap):
    if Dff % 128 != 0 or Dff <= cap:
        return Dff
    for cand in range(cap, 127, -128):
        if Dff % cand == 0:
            return cand
    return Dff


def transformer_block(x, params, *, num_heads,
                      t_tile=None, dff_tile=None,
                      compute_dtype=jnp.bfloat16,
                      vmem_limit_bytes=None):
    """x: (B, T, D) float32.  Grids are tiled over (batch, token tiles, ...)."""
    B, T, D = x.shape
    assert D % num_heads == 0
    hd = D // num_heads
    Dff = params["w1"].shape[1]

    # Generation-aware tiling: v7x has only 64 MiB VMEM per TensorCore.
    vmem_cap = _vmem_capacity_bytes()
    small_vmem = vmem_cap <= 80 * 1024 * 1024
    if vmem_limit_bytes is None:
        vmem_limit_bytes = (40 if small_vmem else 64) * 1024 * 1024
    if t_tile is None:
        t_tile = _pick_t_tile(T, small_vmem)
    assert T % t_tile == 0
    nt = T // t_tile
    if dff_tile is None:
        dff_tile = _pick_dff_tile(Dff, 2048 if small_vmem else 4096)
    assert Dff % dff_tile == 0
    n_dff = Dff // dff_tile

    cd = compute_dtype
    f32 = jnp.float32
    inv_scale = 1.0 / math.sqrt(hd)

    # Stack q/k/v projections along a leading axis so a grid axis streams one
    # (D, D) weight block at a time; fold 1/sqrt(hd) into the q projection.
    w_qkv = jnp.stack([params["wq"] * inv_scale, params["wk"], params["wv"]],
                      axis=0).astype(cd)                    # (3, D, D)
    b_qkv = jnp.stack([params["bq"] * inv_scale, params["bk"], params["bv"]],
                      axis=0).astype(f32)                   # (3, 1, D)
    wo, w1, w2 = (params["wo"].astype(cd), params["w1"].astype(cd), params["w2"].astype(cd))
    bo, b1, b2 = (params["bo"].astype(f32), params["b1"].astype(f32), params["b2"].astype(f32))
    ln1_s, ln1_b = params["ln1_s"].astype(f32), params["ln1_b"].astype(f32)
    ln2_s, ln2_b = params["ln2_s"].astype(f32), params["ln2_b"].astype(f32)

    def cparams(sem):
        return pltpu.CompilerParams(dimension_semantics=sem,
                                    vmem_limit_bytes=vmem_limit_bytes)

    tile_bt = pl.BlockSpec((1, t_tile, D), lambda b, t, j: (b, t, 0))

    # ---- phase 1: LN1 + q/k/v projections (j axis streams the 3 weights) ----
    q, k, v = pl.pallas_call(
        _qkv_kernel,
        out_shape=(jax.ShapeDtypeStruct((B, T, D), cd),) * 3,
        grid_spec=pltpu.PrefetchScalarGridSpec(
            num_scalar_prefetch=0,
            grid=(B, nt, 3),
            in_specs=[
                tile_bt,                                                   # x
                pl.BlockSpec((1, D), lambda b, t, j: (0, 0)),              # ln1 scale
                pl.BlockSpec((1, D), lambda b, t, j: (0, 0)),              # ln1 shift
                pl.BlockSpec((1, D, D), lambda b, t, j: (j, 0, 0)),        # W_{q|k|v}
                pl.BlockSpec((1, 1, D), lambda b, t, j: (j, 0, 0)),        # b_{q|k|v}
            ],
            out_specs=[tile_bt, tile_bt, tile_bt],
            scratch_shapes=[pltpu.VMEM((t_tile, D), jnp.float32)],         # cached LN(x)
        ),
        compiler_params=cparams(("parallel", "parallel", "arbitrary")),
    )(x, ln1_s, ln1_b, w_qkv, b_qkv)

    # ---- phase 2: flash attention + output projection + residual ------------
    # K/V index_maps clamp ki to qi: fully-masked (ki > qi) tiles map to the
    # already-resident block, so no DMA is issued for them (causal DMA-skip).
    x_attn = pl.pallas_call(
        functools.partial(_flash_attn_kernel, num_heads=num_heads),
        out_shape=jax.ShapeDtypeStruct((B, T, D), cd),
        grid_spec=pltpu.PrefetchScalarGridSpec(
            num_scalar_prefetch=0,
            grid=(B, nt, nt),
            in_specs=[
                pl.BlockSpec((1, t_tile, D), lambda b, qi, ki: (b, qi, 0)),                  # q
                pl.BlockSpec((1, t_tile, D), lambda b, qi, ki: (b, jnp.minimum(ki, qi), 0)),  # k
                pl.BlockSpec((1, t_tile, D), lambda b, qi, ki: (b, jnp.minimum(ki, qi), 0)),  # v
                pl.BlockSpec((1, t_tile, D), lambda b, qi, ki: (b, qi, 0)),                  # residual x
                pl.BlockSpec((D, D), lambda b, qi, ki: (0, 0)),                              # Wo
                pl.BlockSpec((1, D), lambda b, qi, ki: (0, 0)),                              # bo
            ],
            out_specs=pl.BlockSpec((1, t_tile, D), lambda b, qi, ki: (b, qi, 0)),
            scratch_shapes=[
                pltpu.VMEM((t_tile, num_heads), jnp.float32),   # running max, per head
                pltpu.VMEM((t_tile, num_heads), jnp.float32),   # running sum, per head
                pltpu.VMEM((t_tile, D), jnp.float32),           # context accumulator
            ],
        ),
        compiler_params=cparams(("parallel", "parallel", "arbitrary")),
    )(q, k, v, x, wo, bo)

    # ---- phase 3: LN2 + FFN (tiled over Dff) + residual ----------------------
    out = pl.pallas_call(
        _ffn_kernel,
        out_shape=jax.ShapeDtypeStruct((B, T, D), x.dtype),
        grid_spec=pltpu.PrefetchScalarGridSpec(
            num_scalar_prefetch=0,
            grid=(B, nt, n_dff),
            in_specs=[
                pl.BlockSpec((1, t_tile, D), lambda b, t, j: (b, t, 0)),   # residual x_attn
                pl.BlockSpec((1, D), lambda b, t, j: (0, 0)),              # ln2 scale
                pl.BlockSpec((1, D), lambda b, t, j: (0, 0)),              # ln2 shift
                pl.BlockSpec((D, dff_tile), lambda b, t, j: (0, j)),       # W1 block
                pl.BlockSpec((1, dff_tile), lambda b, t, j: (0, j)),       # b1 block
                pl.BlockSpec((dff_tile, D), lambda b, t, j: (j, 0)),       # W2 block
                pl.BlockSpec((1, D), lambda b, t, j: (0, 0)),              # b2
            ],
            out_specs=pl.BlockSpec((1, t_tile, D), lambda b, t, j: (b, t, 0)),
            scratch_shapes=[pltpu.VMEM((t_tile, D), jnp.float32),          # cached LN(x)
                            pltpu.VMEM((t_tile, D), jnp.float32)],         # FFN accumulator
        ),
        compiler_params=cparams(("parallel", "parallel", "arbitrary")),
    )(x_attn, ln2_s, ln2_b, w1, b1, w2, b2)
    return out


# --------------------------------------------------------------------------
# Pure-JAX reference of the same forward pass for verification
# --------------------------------------------------------------------------
def _reference(x, p, num_heads):
    eps = 1e-5
    B, T, D = x.shape
    H, hd = num_heads, D // num_heads

    def ln(v, s, b):
        m = jnp.mean(v, -1, keepdims=True)
        var = jnp.mean((v - m) ** 2, -1, keepdims=True)
        return (v - m) / jnp.sqrt(var + eps) * s[0] + b[0]

    xn = ln(x, p["ln1_s"], p["ln1_b"])
    q = xn @ p["wq"] + p["bq"][0]
    k = xn @ p["wk"] + p["bk"][0]
    v = xn @ p["wv"] + p["bv"][0]
    q = q.reshape(B, T, H, hd).transpose(0, 2, 1, 3)
    k = k.reshape(B, T, H, hd).transpose(0, 2, 1, 3)
    v = v.reshape(B, T, H, hd).transpose(0, 2, 1, 3)
    s = jnp.einsum("bhtd,bhsd->bhts", q, k) / math.sqrt(hd)
    mask = jnp.tril(jnp.ones((T, T), bool))
    s = jnp.where(mask[None, None], s, -jnp.inf)
    a = jax.nn.softmax(s, axis=-1)
    ctx = jnp.einsum("bhts,bhsd->bhtd", a, v).transpose(0, 2, 1, 3).reshape(B, T, D)
    x = x + (ctx @ p["wo"] + p["bo"][0])

    xn2 = ln(x, p["ln2_s"], p["ln2_b"])
    h = xn2 @ p["w1"] + p["b1"][0]
    h = 0.5 * h * (1.0 + jnp.tanh(jnp.sqrt(2.0 / jnp.pi) * (h + 0.044715 * h ** 3)))
    return x + (h @ p["w2"] + p["b2"][0])


if __name__ == "__main__":
    # cfg: emb_dim=32, context_length=8, n_heads=4, dropout_rate=0.0, qkv_bias=True
    B, T, D, H = 2, 8, 32, 4
    Dff = 4 * D

    key = jax.random.PRNGKey(0)
    keys = jax.random.split(key, 12)
    scale = 0.05

    params = {
        "ln1_s": jnp.ones((1, D), jnp.float32),
        "ln1_b": jnp.zeros((1, D), jnp.float32),
        "wq": scale * jax.random.normal(keys[0], (D, D), jnp.float32),
        "bq": scale * jax.random.normal(keys[1], (1, D), jnp.float32),
        "wk": scale * jax.random.normal(keys[2], (D, D), jnp.float32),
        "bk": scale * jax.random.normal(keys[3], (1, D), jnp.float32),
        "wv": scale * jax.random.normal(keys[4], (D, D), jnp.float32),
        "bv": scale * jax.random.normal(keys[5], (1, D), jnp.float32),
        "wo": scale * jax.random.normal(keys[6], (D, D), jnp.float32),
        "bo": scale * jax.random.normal(keys[7], (1, D), jnp.float32),
        "ln2_s": jnp.ones((1, D), jnp.float32),
        "ln2_b": jnp.zeros((1, D), jnp.float32),
        "w1": scale * jax.random.normal(keys[8], (D, Dff), jnp.float32),
        "b1": scale * jax.random.normal(keys[9], (1, Dff), jnp.float32),
        "w2": scale * jax.random.normal(keys[10], (Dff, D), jnp.float32),
        "b2": scale * jax.random.normal(keys[11], (1, D), jnp.float32),
    }

    x = jax.random.normal(jax.random.PRNGKey(42), (B, T, D), jnp.float32)
    ref = _reference(x, params, H)

    # f32 matmul operands: tighter structural check.
    out_f32 = jax.block_until_ready(
        transformer_block(x, params, num_heads=H, compute_dtype=jnp.float32))
    assert out_f32.shape == (B, T, D)
    assert jnp.allclose(out_f32, ref, atol=1e-2, rtol=1e-2), "f32 kernel mismatch vs reference"

    # bf16 matmul operands, f32 accumulation (production path): looser tolerance.
    out_bf16 = jax.block_until_ready(
        transformer_block(x, params, num_heads=H, compute_dtype=jnp.bfloat16))
    assert out_bf16.shape == (B, T, D)
    assert jnp.allclose(out_bf16, ref, atol=3e-2, rtol=3e-2), "bf16 kernel mismatch vs reference"

    print("KERNEL_OK")
</pallas_src>

<mosaic_0001>
module attributes {stable_mosaic.version = 11 : i64} {
  func.func @_qkv_kernel(%arg0: i32, %arg1: i32, %arg2: i32, %arg3: memref<1x8x32xf32, #tpu.memory_space<vmem>>, %arg4: memref<1x32xf32, #tpu.memory_space<vmem>>, %arg5: memref<1x32xf32, #tpu.memory_space<vmem>>, %arg6: memref<1x32x32xf32, #tpu.memory_space<vmem>>, %arg7: memref<1x1x32xf32, #tpu.memory_space<vmem>>, %arg8: memref<1x8x32xf32, #tpu.memory_space<vmem>>, %arg9: memref<1x8x32xf32, #tpu.memory_space<vmem>>, %arg10: memref<1x8x32xf32, #tpu.memory_space<vmem>>, %arg11: memref<8x32xf32, #tpu.memory_space<vmem>>) attributes {dimension_semantics = [#tpu.dimension_semantics<parallel>, #tpu.dimension_semantics<parallel>, #tpu.dimension_semantics<arbitrary>], iteration_bounds = array<i64: 2, 1, 3>, scalar_prefetch = 0 : i64, scratch_operands = 1 : i64, tpu.core_type = #tpu.core_type<tc>, window_params = [{transform_indices = @transform_0, window_bounds = array<i64: 1, 8, 32>}, {pipeline_mode = #tpu.pipeline_mode<synchronous>, transform_indices = @transform_1, window_bounds = array<i64: 1, 32>}, {pipeline_mode = #tpu.pipeline_mode<synchronous>, transform_indices = @transform_2, window_bounds = array<i64: 1, 32>}, {transform_indices = @transform_3, window_bounds = array<i64: 1, 32, 32>}, {transform_indices = @transform_4, window_bounds = array<i64: 1, 1, 32>}, {transform_indices = @transform_5, window_bounds = array<i64: 1, 8, 32>}, {transform_indices = @transform_6, window_bounds = array<i64: 1, 8, 32>}, {transform_indices = @transform_7, window_bounds = array<i64: 1, 8, 32>}]} {
    %c0_i32 = arith.constant 0 : i32
    %0 = arith.cmpi eq, %arg2, %c0_i32 : i32
    %1 = arith.extui %0 : i1 to i32
    %c0_i32_0 = arith.constant 0 : i32
    %2 = arith.cmpi ne, %1, %c0_i32_0 : i32
    scf.if %2 {
      %c0_12 = arith.constant 0 : index
      %c0_13 = arith.constant 0 : index
      %c0_14 = arith.constant 0 : index
      %20 = vector.load %arg3[%c0_12, %c0_13, %c0_14] : memref<1x8x32xf32, #tpu.memory_space<vmem>>, vector<1x8x32xf32>
      %21 = vector.shape_cast %20 : vector<1x8x32xf32> to vector<8x32xf32>
      %c0_15 = arith.constant 0 : index
      %c0_16 = arith.constant 0 : index
      %22 = vector.load %arg4[%c0_15, %c0_16] : memref<1x32xf32, #tpu.memory_space<vmem>>, vector<1x32xf32>
      %23 = vector.shape_cast %22 : vector<1x32xf32> to vector<32xf32>
      %c0_17 = arith.constant 0 : index
      %c0_18 = arith.constant 0 : index
      %24 = vector.load %arg5[%c0_17, %c0_18] : memref<1x32xf32, #tpu.memory_space<vmem>>, vector<1x32xf32>
      %25 = vector.shape_cast %24 : vector<1x32xf32> to vector<32xf32>
      %cst_19 = arith.constant dense<0.000000e+00> : vector<8xf32>
      %26 = vector.multi_reduction <add>, %21, %cst_19 [1] : vector<8x32xf32> to vector<8xf32>
      %27 = vector.shape_cast %26 : vector<8xf32> to vector<8x1xf32>
      %cst_20 = arith.constant 3.200000e+01 : f32
      %28 = vector.broadcast %cst_20 : f32 to vector<8x1xf32>
      %29 = arith.divf %27, %28 : vector<8x1xf32>
      %30 = vector.broadcast %29 : vector<8x1xf32> to vector<8x32xf32>
      %31 = arith.subf %21, %30 : vector<8x32xf32>
      %32 = arith.mulf %31, %31 : vector<8x32xf32>
      %cst_21 = arith.constant dense<0.000000e+00> : vector<8xf32>
      %33 = vector.multi_reduction <add>, %32, %cst_21 [1] : vector<8x32xf32> to vector<8xf32>
      %34 = vector.shape_cast %33 : vector<8xf32> to vector<8x1xf32>
      %cst_22 = arith.constant 3.200000e+01 : f32
      %35 = vector.broadcast %cst_22 : f32 to vector<8x1xf32>
      %36 = arith.divf %34, %35 : vector<8x1xf32>
      %37 = vector.broadcast %29 : vector<8x1xf32> to vector<8x32xf32>
      %38 = arith.subf %21, %37 : vector<8x32xf32>
      %cst_23 = arith.constant 9.99999974E-6 : f32
      %39 = vector.broadcast %cst_23 : f32 to vector<8x1xf32>
      %40 = arith.addf %36, %39 : vector<8x1xf32>
      %41 = math.rsqrt %40 : vector<8x1xf32>
      %42 = vector.broadcast %41 : vector<8x1xf32> to vector<8x32xf32>
      %43 = arith.mulf %38, %42 : vector<8x32xf32>
      %44 = vector.shape_cast %23 : vector<32xf32> to vector<1x32xf32>
      %45 = vector.broadcast %44 : vector<1x32xf32> to vector<8x32xf32>
      %46 = arith.mulf %43, %45 : vector<8x32xf32>
      %47 = vector.shape_cast %25 : vector<32xf32> to vector<1x32xf32>
      %48 = vector.broadcast %47 : vector<1x32xf32> to vector<8x32xf32>
      %49 = arith.addf %46, %48 : vector<8x32xf32>
      %c0_24 = arith.constant 0 : index
      %c0_25 = arith.constant 0 : index
      %50 = vector.load %arg11[%c0_24, %c0_25] : memref<8x32xf32, #tpu.memory_space<vmem>>, vector<8x32xf32>
      tpu.vector_store %arg11[%c0_24, %c0_25], %49 {strides = array<i32>} : memref<8x32xf32, #tpu.memory_space<vmem>>, vector<8x32xf32>,
    } else {
    }
    %c0 = arith.constant 0 : index
    %c0_1 = arith.constant 0 : index
    %3 = vector.load %arg11[%c0, %c0_1] : memref<8x32xf32, #tpu.memory_space<vmem>>, vector<8x32xf32>
    %c0_2 = arith.constant 0 : index
    %c0_3 = arith.constant 0 : index
    %c0_4 = arith.constant 0 : index
    %4 = vector.load %arg6[%c0_2, %c0_3, %c0_4] : memref<1x32x32xf32, #tpu.memory_space<vmem>>, vector<1x32x32xf32>
    %5 = vector.shape_cast %4 : vector<1x32x32xf32> to vector<32x32xf32>
    %cst = arith.constant dense<0.000000e+00> : vector<8x32xf32>
    %6 = tpu.matmul %3, %5, %cst {dimension_numbers = #tpu.dot_dimension_numbers<[1], [0], [0], [1], [0, 0, 1, 1], [], []>} : vector<8x32xf32>, vector<32x32xf32>, vector<8x32xf32> -> vector<8x32xf32>
    %c0_5 = arith.constant 0 : index
    %c0_6 = arith.constant 0 : index
    %c0_7 = arith.constant 0 : index
    %7 = vector.load %arg7[%c0_5, %c0_6, %c0_7] : memref<1x1x32xf32, #tpu.memory_space<vmem>>, vector<1x1x32xf32>
    %8 = vector.shape_cast %7 : vector<1x1x32xf32> to vector<1x32xf32>
    %9 = vector.broadcast %8 : vector<1x32xf32> to vector<8x32xf32>
    %10 = arith.addf %6, %9 : vector<8x32xf32>
    %c0_i32_8 = arith.constant 0 : i32
    %11 = arith.cmpi eq, %arg2, %c0_i32_8 : i32
    %12 = arith.extui %11 : i1 to i32
    %c0_i32_9 = arith.constant 0 : i32
    %13 = arith.cmpi ne, %12, %c0_i32_9 : i32
    scf.if %13 {
      %c0_12 = arith.constant 0 : index
      %c0_13 = arith.constant 0 : index
      %c0_14 = arith.constant 0 : index
      %20 = vector.load %arg8[%c0_12, %c0_13, %c0_14] : memref<1x8x32xf32, #tpu.memory_space<vmem>>, vector<1x8x32xf32>
      %21 = vector.shape_cast %20 : vector<1x8x32xf32> to vector<8x32xf32>
      %22 = vector.shape_cast %10 : vector<8x32xf32> to vector<1x8x32xf32>
      tpu.vector_store %arg8[%c0_12, %c0_13, %c0_14], %22 {strides = array<i32>} : memref<1x8x32xf32, #tpu.memory_space<vmem>>, vector<1x8x32xf32>,
    } else {
    }
    %c1_i32 = arith.constant 1 : i32
    %14 = arith.cmpi eq, %arg2, %c1_i32 : i32
    %15 = arith.extui %14 : i1 to i32
    %c0_i32_10 = arith.constant 0 : i32
    %16 = arith.cmpi ne, %15, %c0_i32_10 : i32
    scf.if %16 {
      %c0_12 = arith.constant 0 : index
      %c0_13 = arith.constant 0 : index
      %c0_14 = arith.constant 0 : index
      %20 = vector.load %arg9[%c0_12, %c0_13, %c0_14] : memref<1x8x32xf32, #tpu.memory_space<vmem>>, vector<1x8x32xf32>
      %21 = vector.shape_cast %20 : vector<1x8x32xf32> to vector<8x32xf32>
      %22 = vector.shape_cast %10 : vector<8x32xf32> to vector<1x8x32xf32>
      tpu.vector_store %arg9[%c0_12, %c0_13, %c0_14], %22 {strides = array<i32>} : memref<1x8x32xf32, #tpu.memory_space<vmem>>, vector<1x8x32xf32>,
    } else {
    }
    %c2_i32 = arith.constant 2 : i32
    %17 = arith.cmpi eq, %arg2, %c2_i32 : i32
    %18 = arith.extui %17 : i1 to i32
    %c0_i32_11 = arith.constant 0 : i32
    %19 = arith.cmpi ne, %18, %c0_i32_11 : i32
    scf.if %19 {
      %c0_12 = arith.constant 0 : index
      %c0_13 = arith.constant 0 : index
      %c0_14 = arith.constant 0 : index
      %20 = vector.load %arg10[%c0_12, %c0_13, %c0_14] : memref<1x8x32xf32, #tpu.memory_space<vmem>>, vector<1x8x32xf32>
      %21 = vector.shape_cast %20 : vector<1x8x32xf32> to vector<8x32xf32>
      %22 = vector.shape_cast %10 : vector<8x32xf32> to vector<1x8x32xf32>
      tpu.vector_store %arg10[%c0_12, %c0_13, %c0_14], %22 {strides = array<i32>} : memref<1x8x32xf32, #tpu.memory_space<vmem>>, vector<1x8x32xf32>,
    } else {
    }
    return
  }
  func.func @transform_0(%arg0: i32, %arg1: i32, %arg2: i32) -> (i32, i32, i32) {
    %c0_i32 = arith.constant 0 : i32
    %c0_i32_0 = arith.constant 0 : i32
    return %arg0, %arg1, %c0_i32 : i32, i32, i32
  }
  func.func @transform_1(%arg0: i32, %arg1: i32, %arg2: i32) -> (i32, i32) {
    %c0_i32 = arith.constant 0 : i32
    %c0_i32_0 = arith.constant 0 : i32
    %c0_i32_1 = arith.constant 0 : i32
    return %c0_i32, %c0_i32_0 : i32, i32
  }
  func.func @transform_2(%arg0: i32, %arg1: i32, %arg2: i32) -> (i32, i32) {
    %c0_i32 = arith.constant 0 : i32
    %c0_i32_0 = arith.constant 0 : i32
    %c0_i32_1 = arith.constant 0 : i32
    return %c0_i32, %c0_i32_0 : i32, i32
  }
  func.func @transform_3(%arg0: i32, %arg1: i32, %arg2: i32) -> (i32, i32, i32) {
    %c0_i32 = arith.constant 0 : i32
    %c0_i32_0 = arith.constant 0 : i32
    %c0_i32_1 = arith.constant 0 : i32
    return %arg2, %c0_i32, %c0_i32_0 : i32, i32, i32
  }
  func.func @transform_4(%arg0: i32, %arg1: i32, %arg2: i32) -> (i32, i32, i32) {
    %c0_i32 = arith.constant 0 : i32
    %c0_i32_0 = arith.constant 0 : i32
    %c0_i32_1 = arith.constant 0 : i32
    return %arg2, %c0_i32, %c0_i32_0 : i32, i32, i32
  }
  func.func @transform_5(%arg0: i32, %arg1: i32, %arg2: i32) -> (i32, i32, i32) {
    %c0_i32 = arith.constant 0 : i32
    %c0_i32_0 = arith.constant 0 : i32
    return %arg0, %arg1, %c0_i32 : i32, i32, i32
  }
  func.func @transform_6(%arg0: i32, %arg1: i32, %arg2: i32) -> (i32, i32, i32) {
    %c0_i32 = arith.constant 0 : i32
    %c0_i32_0 = arith.constant 0 : i32
    return %arg0, %arg1, %c0_i32 : i32, i32, i32
  }
  func.func @transform_7(%arg0: i32, %arg1: i32, %arg2: i32) -> (i32, i32, i32) {
    %c0_i32 = arith.constant 0 : i32
    %c0_i32_0 = arith.constant 0 : i32
    return %arg0, %arg1, %c0_i32 : i32, i32, i32
  }
}

</mosaic_0001>

<bundles_post_ra>
// kernel: tpu_custom_call.1
= control target key start
LH: loop header
LB: loop body
LE: loop exit
PB: predicated region body
PF: predicated region fallthrough
CT: control target
= control target key end

     0   :  { %s1923_s0 = inlined_call_operand.hbm [shape: f32[2,8,32], index: 0, kind: input, shape index: {}]   ;;  %s1924_s1 = inlined_call_operand.hbm [shape: f32[1,32], index: 1, kind: input, shape index: {}]   ;;  %s1925_s2 = inlined_call_operand.hbm [shape: f32[1,32], index: 2, kind: input, shape index: {}]   ;;  %s1926_s3 = inlined_call_operand.hbm [shape: f32[3,32,32], index: 3, kind: input, shape index: {}]   ;;  %s1927_s4 = inlined_call_operand.hbm [shape: f32[3,1,32], index: 4, kind: input, shape index: {}]   ;;  %s1928_s5 = inlined_call_operand.hbm [shape: f32[2,8,32], index: 5, kind: output, shape index: {0}]   ;;  %s1929_s6 = inlined_call_operand.hbm [shape: f32[2,8,32], index: 6, kind: output, shape index: {1}]   ;;  %s1930_s7 = inlined_call_operand.hbm [shape: f32[2,8,32], index: 7, kind: output, shape index: {2}]  }
   0x1   :  { %1951 = sst [smem:[#allocation26_spill]] %s1923_s0 }
   0x2   :  { %1952 = sst [smem:[#allocation27_spill]] %s1924_s1 }
   0x3   :  { %1953 = sst [smem:[#allocation28_spill]] %s1925_s2 }
   0x4   :  { %1954 = sst [smem:[#allocation29_spill]] %s1926_s3 }
   0x5   :  { %1955 = sst [smem:[#allocation30_spill]] %s1928_s5 }
   0x6   :  { %1956 = sst [smem:[#allocation31_spill]] %s1929_s6 }
   0x7   :  { %1957 = sst [smem:[#allocation32_spill]] %s1930_s7 }
   0x8   :  { %13 = vsyncpa [#allocation4], 0 }
   0x9   :  { %15 = vsyncpa [#allocation4 + $0x1], 0 }
   0xa   :  { %16 = vsyncpa [#allocation7], 0 }
   0xb   :  { %17 = vsyncpa [#allocation10], 0 }
   0xc   :  { %19 = vsyncpa [#allocation10 + $0x1], 0 }
   0xd   :  { %20 = vsyncpa [#allocation5], 0 }
   0xe   :  { %22 = vsyncpa [#allocation5 + $0x1], 0 }
   0xf   :  { %23 = vsyncpa [#allocation14], 0 }
  0x10   :  { %25 = vsyncpa [#allocation14 + $0x1], 0  ;;  %s1434_s24 = smov 0   ;;  %s1436_s25 = smov 0  }
  0x11   :  { %s1438_s26 = smov 0   ;;  %s1440_s27 = smov 0  }
  0x12   :  { %s1442_s28 = smov 0   ;;  %s1444_s29 = smov 0  }
  0x13   :  { %s1446_s30 = smov 0   ;;  %s1448_s8 = smov 0  }
  0x14   :  { %s1450_s9 = smov 0   ;;  %s1452_s10 = smov 0  }
  0x15   :  { %s1454_s11 = smov 0  }
  0x16 LB: > { %1958 = sst [smem:[#allocation21_spill]] %s1363_s30  ;;  %s1488_s12 = sadd.s32 4294967295, %s1379_s11   ;;  %s1379_s11 = sphi %s1454_s11, %s31_s11   ;;  %s1375_s10 = sphi %s1452_s10, %s2009_s10   ;;  %s1371_s9 = sphi %s1450_s9, %s2017_s9   ;;  %s1367_s8 = sphi %s1448_s8, %s2007_s8   ;;  %s1363_s30 = sphi %s1446_s30, %s2016_s30   ;;  %s1359_s29 = sphi %s1444_s29, %s2015_s29   ;;  %s1355_s28 = sphi %s1442_s28, %s2014_s28   ;;  %s1351_s27 = sphi %s1440_s27, %s2013_s27   ;;  %s1347_s26 = sphi %s1438_s26, %s2012_s26   ;;  %s1343_s25 = sphi %s1436_s25, %s2011_s25   ;;  %s1339_s24 = sphi %s1434_s24, %s2010_s24  }
  0x17   : > { %1959 = sst [smem:[#allocation22_spill]] %s1367_s8  ;;  %p140_p0 = scmp.ne.s32.totalorder %s1343_s25, %s1339_s24 }
  0x18   : > { %1960 = sst [smem:[#allocation23_spill]] %s1375_s10  ;;  %p1931_p1 = scmp.eq.s32.totalorder %s1488_s12, 0 }
  0x19   : > { %p836_p3 = scmp.ge.s32.totalorder %s1379_s11, 1  ;;  %p261_p4 = scmp.lt.s32.totalorder %s1379_s11, 7 }
  0x1a   : > { %p1497_p5 = por %p140_p0, %p1931_p1  ;;  %s1381_s15 = smov [#allocation6]  }
  0x1b   : > { %p1501_p6 = pnand %p836_p3, %p261_p4  ;;  %s274_s16 = sshll.u32 %s1381_s15, 4  ;;  %s275_s16 = int_to_ptr.vmem [resolvable:$true] %s274_s16 }
  0x1c   : > { %s1961_s13 = scalar_select %p1497_p5, 1, 0 }
  0x1d   : > { %s1962_s14 = scalar_select %p1501_p6, 1, 0 }
  0x1e   : > { %p913_p7 = pneg %p1501_p6  ;;  %s1964_s1 = sld [smem:[#allocation27_spill]] }
  0x20   : > { %p1509_p8 = pnand %p913_p7, %p1931_p1 }
  0x22   : > { %p1939_p11 = pneg %p1509_p8 }
  0x24   : > { %s1043_s21 = scalar_lea.hbm %s1964_s1, 16 }
  0x25   : > { %p1044_p10 = scmp.ne.s32.totalorder %s1964_s1, %s1043_s21  ;;  %p1050_p0 = scmp.lt.u32.totalorder %s1043_s21, %s1964_s1 }
  0x27   : > { %p1046_p12 = pnand %p1939_p11, %p1044_p10 }
  0x29   : > { %p1047_p13 = pneg %p1046_p12 }
  0x2b   : > { %p1052_p3 = pnand %p1050_p0, %p1047_p13 }
  0x2d   : > { %1055 = shalt.err (!%p1052_p3)
}
  0x2e   : > { %s1056_s18 = scalar_lea.vmem %s275_s16, 16  ;;  %s1063_s19 = scalar_lea.vmem %s275_s16, 32 }
  0x2f   : > { %p1057_p4 = scmp.ne.s32.totalorder %s275_s16, %s1056_s18  ;;  %p1064_p1 = scmp.lt.s32.totalorder %s275_s16, %s275_s16 }
  0x30   : > { %p1065_p9 = scmp.lt.s32.totalorder %s1063_s19, %s1056_s18 }
  0x31   : > { %p1059_p7 = pnand %p1057_p4, %p1939_p11 }
  0x32   : > { %p1066_p5 = por %p1065_p9, %p1064_p1 }
  0x33   : > { %p1060_p2 = pneg %p1059_p7 }
  0x35   : > { %p1067_p6 = pnand %p1066_p5, %p1060_p2 }
  0x37   : > { %1070 = shalt.err (!%p1067_p6)
}
  0x38   : > { %916 = dma.hbm_to_vmem [thread:$0]  (!%p1509_p8), %s1964_s1, 16, %s275_s16, [#allocation7]  }
  0x39   : > { %p134_p1 = scmp.ne.s32.totalorder %s1347_s26, %s1343_s25  ;;  %p1938_p2 = scmp.lt.s32.totalorder %s1379_s11, 6 }
  0x3a   : > { %s315_s21 = sand.u32 1, %s1379_s11   ;;  %p1965_p5 = scmp.eq.s32.totalorder %s1379_s11, 0 }
  0x3b   : > { %s1934_s23 = sand.u32 1, %s1347_s26   ;;  %s870_s24 = sshll.u32 %s1371_s9, 9 }
  0x3c   : > { %p136_p6 = por %p134_p1, %p1965_p5  ;;  %s842_s15 = sshll.u32 %s1934_s23, 5 }
  0x3d   : > { %s1966_s3 = sld [smem:[#allocation29_spill]]  ;;  %s319_s18 = scalar_lea.vmem [#allocation9], %s842_s15 }
  0x3e   : > { %p1555_p9 = pnand %p1938_p2, %p136_p6  ;;  %s326_s1 = sshll.u32 %s319_s18, 4  ;;  %s1559_s1 = int_to_ptr.vmem [resolvable:$true] %s326_s1 }
  0x3f   : > { %s1561_s23 = scalar_lea.sflag [#allocation10], %s315_s21 }
  0x40   : > { %s1967_s16 = scalar_select %p1555_p9, 1, 0 }
  0x41   : > { %p1940_p12 = pneg %p1555_p9 }
  0x43   : > { %s1551_s22 = scalar_lea.hbm %s1966_s3, %s870_s24  ;;  %s1076_s7 = scalar_lea.hbm %s1966_s3, 1536 }
  0x44   : > { %s1071_s19 = scalar_lea.hbm %s1551_s22, 512  ;;  %p1077_p3 = scmp.lt.u32.totalorder %s1551_s22, %s1966_s3 }
  0x45   : > { %p1072_p10 = scmp.ne.s32.totalorder %s1551_s22, %s1071_s19  ;;  %p1078_p4 = scmp.lt.u32.totalorder %s1076_s7, %s1071_s19 }
  0x46   : > { %p1080_p1 = scmp.lt.u32.totalorder %s1071_s19, %s1551_s22 }
  0x47   : > { %p1074_p13 = pnand %p1940_p12, %p1072_p10  ;;  %p1079_p7 = por %p1078_p4, %p1077_p3 }
  0x49   : > { %p1075_p0 = pneg %p1074_p13  ;;  %p1081_p5 = por %p1080_p1, %p1079_p7 }
  0x4b   : > { %p1082_p6 = pnand %p1081_p5, %p1075_p0 }
  0x4d   : > { %1085 = shalt.err (!%p1082_p6)
}
  0x4e   : > { %s1086_s18 = scalar_lea.vmem %s1559_s1, 512  ;;  %s1382_s21 = smov [#allocation9]  }
  0x4f   : > { %p1087_p10 = scmp.ne.s32.totalorder %s1559_s1, %s1086_s18  ;;  %s1091_s15 = sshll.u32 %s1382_s21, 4  ;;  %s1092_s15 = int_to_ptr.vmem [resolvable:$false] %s1091_s15 }
  0x50   : > { %s1093_s5 = scalar_lea.vmem %s1092_s15, 1024  ;;  %p1094_p11 = scmp.lt.s32.totalorder %s1559_s1, %s1092_s15 }
  0x51   : > { %p1089_p13 = pnand %p1087_p10, %p1940_p12  ;;  %p1095_p3 = scmp.lt.s32.totalorder %s1093_s5, %s1086_s18 }
  0x53   : > { %p1090_p2 = pneg %p1089_p13  ;;  %p1096_p4 = por %p1095_p3, %p1094_p11 }
  0x55   : > { %p1097_p7 = pnand %p1096_p4, %p1090_p2 }
  0x57   : > { %1100 = shalt.err (!%p1097_p7)
}
  0x58   : > { %s1383_s6 = smov 128   ;;  %s1384_s7 = smov 8  }
  0x59   : > { %926 = dma.hbm_to_vmem [thread:$0]  (!%p1555_p9), %s1551_s22, 512, %s1559_s1, %s1561_s23, %s1383_s6, %s1383_s6, %s1384_s7  }
  0x5a   : > { %s1385_s19 = smov [#allocation8]   ;;  %s1968_s2 = sld [smem:[#allocation28_spill]] }
  0x5b   : > { %s285_s24 = sshll.u32 %s1385_s19, 4  ;;  %p1969_p2 = pneg %p1509_p8  ;;  %s286_s24 = int_to_ptr.vmem [resolvable:$true] %s285_s24 }
  0x60   : > { %s1101_s15 = scalar_lea.hbm %s1968_s2, 16 }
  0x61   : > { %p1102_p11 = scmp.ne.s32.totalorder %s1968_s2, %s1101_s15  ;;  %p1108_p5 = scmp.lt.u32.totalorder %s1101_s15, %s1968_s2 }
  0x63   : > { %p1104_p0 = pnand %p1102_p11, %p1969_p2 }
  0x65   : > { %p1105_p1 = pneg %p1104_p0 }
  0x67   : > { %p1110_p6 = pnand %p1108_p5, %p1105_p1 }
  0x69   : > { %1113 = shalt.err (!%p1110_p6)
}
  0x6a   : > { %s1114_s1 = scalar_lea.vmem %s286_s24, 16  ;;  %p1970_p13 = pmov %p1969_p2 }
  0x6b   : > { %p1115_p10 = scmp.ne.s32.totalorder %s286_s24, %s1114_s1  ;;  %s1121_s22 = scalar_lea.vmem %s286_s24, 32 }
  0x6c   : > { %p1122_p7 = scmp.lt.s32.totalorder %s286_s24, %s286_s24  ;;  %p1123_p12 = scmp.lt.s32.totalorder %s1121_s22, %s1114_s1 }
  0x6d   : > { %p1117_p3 = pnand %p1115_p10, %p1970_p13 }
  0x6e   : > { %p1124_p9 = por %p1123_p12, %p1122_p7 }
  0x6f   : > { %p1118_p4 = pneg %p1117_p3 }
  0x71   : > { %p1125_p2 = pnand %p1124_p9, %p1118_p4 }
  0x73   : > { %1128 = shalt.err (!%p1125_p2)
}
  0x74   : > { %919 = dma.hbm_to_vmem [thread:$0]  (!%p1509_p8), %s1968_s2, 16, %s286_s24, [#allocation7]  }
  0x75   : > { %s1946_s8 = sadd.s32 4294967294, %s1379_s11   ;;  %s1971_s17 = sadd.s32 1, %s1371_s9 }
  0x76   : > { %p44_p9 = scmp.ge.s32.totalorder %s1971_s17, 3  ;;  %s50_s7 = sadd.s32 1, %s1375_s10 }
  0x77   : > { %s59_s19 = sadd.s32 1, %s1359_s29  ;;  %s1972_s20 = smov %s1971_s17 }
  0x78   : > { %s2019_s20 = smov (%p44_p9, %s1972_s20), 0  ;;  %s2021_s7 = smov (!%p44_p9, %s50_s7), %s1375_s10 }
  0x79   : > { %1973 = sst [smem:[#allocation24_spill]] %s2019_s20  ;;  %p66_p12 = scmp.ne.s32.totalorder %s1359_s29, %s1355_s28 }
  0x7a   : > { %p72_p8 = scmp.ne.s32.totalorder %s1355_s28, %s1351_s27  ;;  %p52_p11 = scmp.ge.s32.totalorder %s2021_s7, 2 }
  0x7b   : > { %s124_s24 = ssub.s32 %s1371_s9, %s2019_s20  ;;  %p1974_p0 = scmp.eq.s32.totalorder %s1379_s11, 0 }
  0x7c   : > { %p1976_p5 = scmp.eq.s32.totalorder %s1488_s12, 0  ;;  %s2023_s7 = smov (%p52_p11, %s2021_s7), 0 }
  0x7d   : > { %p1627_p1 = por %p1974_p0, %p66_p12  ;;  %1978 = sst [smem:[#allocation25_spill]] %s2023_s7 }
  0x7e   : > { %p1636_p6 = por %p1976_p5, %p72_p8  ;;  %p125_p10 = scmp.eq.s32.totalorder %s124_s24, 0 }
  0x7f   : > { %p1979_p13 = scmp.eq.s32.totalorder %s1488_s12, 5  ;;  %s54_s5 = ssub.s32 %s1375_s10, %s2023_s7 }
  0x80   : > { %s1977_s15 = scalar_select %p1636_p6, 1, 0 }
  0x81   : > { %p1644_p3 = por %p1979_p13, %p66_p12  ;;  %p198_p4 = scmp.eq.s32.totalorder %s1946_s8, 5 }
  0x82   : > { %p57_p7 = scmp.eq.s32.totalorder %s54_s5, 0  ;;  %s296_s1 = sand.u32 1, %s1359_s29  }
  0x83   : > { %s1980_s18 = scalar_select %p1644_p3, 1, 0 }
  0x84   : > { %s1981_s22 = sadd.s32 1, %s1347_s26  ;;  %p1664_p2 = por %p198_p4, %p72_p8 }
  0x85   : > { %s1656_s6 = scalar_select %p125_p10, %s1347_s26, %s1981_s22  }
  0x86   : > { %s1659_s3 = scalar_select %p57_p7, %s1359_s29, %s59_s19  }
  0x87   : > { %s1982_s17 = scalar_select %p1664_p2, 1, 0 }
  0x88   : > { %s840_s24 = sshll.u32 %s296_s1, 3  ;;  %s841_s2 = sshll.u32 %s1375_s10, 7 }
  0x89   : > { %s1983_s0 = sld [smem:[#allocation26_spill]]  ;;  %s300_s5 = scalar_lea.vmem [#allocation3], %s840_s24 }
  0x8a   : > { %s308_s22 = sshll.u32 %s300_s5, 4  ;;  %p1984_p9 = scmp.lt.s32.totalorder %s1379_s11, 6  ;;  %s1682_s22 = int_to_ptr.vmem [resolvable:$true] %s308_s22 }
  0x8b   : > { %s845_s8 = sshll.u32 %s1371_s9, 4  ;;  %s297_s30 = scalar_lea.sflag [#allocation4], %s296_s1 }
  0x8c   : > { %p1678_p12 = pnand %p1984_p9, %p1627_p1 }
  0x8e   : > { %p1131_p11 = pneg %p1678_p12 }
  0x8f   : > { %s1672_s7 = scalar_lea.hbm %s1983_s0, %s841_s2  ;;  %s1134_s24 = scalar_lea.hbm %s1983_s0, 256 }
  0x90   : > { %s1129_s2 = scalar_lea.hbm %s1672_s7, 128  ;;  %p1135_p1 = scmp.lt.u32.totalorder %s1672_s7, %s1983_s0 }
  0x91   : > { %p1130_p8 = scmp.ne.s32.totalorder %s1672_s7, %s1129_s2  ;;  %p1136_p10 = scmp.lt.u32.totalorder %s1134_s24, %s1129_s2 }
  0x92   : > { %p1138_p4 = scmp.lt.u32.totalorder %s1129_s2, %s1672_s7 }
  0x93   : > { %p1132_p0 = pnand %p1131_p11, %p1130_p8  ;;  %p1137_p13 = por %p1136_p10, %p1135_p1 }
  0x95   : > { %p1133_p5 = pneg %p1132_p0  ;;  %p1139_p7 = por %p1138_p4, %p1137_p13 }
  0x97   : > { %p1140_p9 = pnand %p1139_p7, %p1133_p5 }
  0x99   : > { %1143 = shalt.err (!%p1140_p9)
}
  0x9a   : > { %s1144_s1 = scalar_lea.vmem %s1682_s22, 128  ;;  %s1386_s20 = smov [#allocation3]  }
  0x9b   : > { %p1145_p8 = scmp.ne.s32.totalorder %s1682_s22, %s1144_s1  ;;  %s1149_s21 = sshll.u32 %s1386_s20, 4  ;;  %s1150_s21 = int_to_ptr.vmem [resolvable:$false] %s1149_s21 }
  0x9c   : > { %s1151_s10 = scalar_lea.vmem %s1150_s21, 256  ;;  %p1152_p3 = scmp.lt.s32.totalorder %s1682_s22, %s1150_s21 }
  0x9d   : > { %p1147_p0 = pnand %p1145_p8, %p1131_p11  ;;  %p1153_p1 = scmp.lt.s32.totalorder %s1151_s10, %s1144_s1 }
  0x9f   : > { %p1148_p2 = pneg %p1147_p0  ;;  %p1154_p10 = por %p1153_p1, %p1152_p3 }
  0xa1   : > { %p1155_p13 = pnand %p1154_p10, %p1148_p2 }
  0xa3   : > { %1158 = shalt.err (!%p1155_p13)
}
  0xa4   : > { %923 = dma.hbm_to_vmem [thread:$0]  (!%p1678_p12), %s1672_s7, 128, %s1682_s22, %s297_s30  }
  0xa5   : > { %s1715_s5 = scalar_lea.hbm %s1927_s4, %s845_s8  ;;  %s1986_s20 = sand.u32 1, %s1347_s26  }
  0xa6   : > { %s339_s1 = scalar_lea.vmem [#allocation11], %s1986_s20  ;;  %s1159_s19 = scalar_lea.hbm %s1715_s5, 16 }
  0xa7   : > { %s346_s21 = sshll.u32 %s339_s1, 4  ;;  %p1160_p3 = scmp.ne.s32.totalorder %s1715_s5, %s1159_s19  ;;  %s347_s21 = int_to_ptr.vmem [resolvable:$true] %s346_s21 }
  0xa8   : > { %p1987_p2 = scmp.ne.s32.totalorder %s1967_s16, 0  ;;  %s1164_s30 = scalar_lea.hbm %s1927_s4, 48 }
  0xa9   : > { %p1165_p4 = scmp.lt.u32.totalorder %s1715_s5, %s1927_s4  ;;  %p1166_p7 = scmp.lt.u32.totalorder %s1164_s30, %s1159_s19 }
  0xaa   : > { %p1988_p11 = pneg %p1987_p2  ;;  %p1168_p8 = scmp.lt.u32.totalorder %s1159_s19, %s1715_s5 }
  0xab   : > { %p1167_p9 = por %p1166_p7, %p1165_p4 }
  0xac   : > { %p1162_p5 = pnand %p1160_p3, %p1988_p11 }
  0xad   : > { %p1169_p0 = por %p1168_p8, %p1167_p9 }
  0xae   : > { %p1163_p12 = pneg %p1162_p5 }
  0xb0   : > { %p1170_p1 = pnand %p1169_p0, %p1163_p12 }
  0xb2   : > { %1173 = shalt.err (!%p1170_p1)
}
  0xb3   : > { %s1174_s2 = scalar_lea.vmem %s347_s21, 16  ;;  %p1989_p13 = pmov %p1988_p11 }
  0xb4   : > { %p1175_p10 = scmp.ne.s32.totalorder %s347_s21, %s1174_s2  ;;  %s1387_s24 = smov [#allocation11]  }
  0xb5   : > { %s1179_s20 = sshll.u32 %s1387_s24, 4  ;;  %s1180_s20 = int_to_ptr.vmem [resolvable:$false] %s1179_s20 }
  0xb6   : > { %p1177_p3 = pnand %p1175_p10, %p1989_p13  ;;  %s1181_s1 = scalar_lea.vmem %s1180_s20, 32 }
  0xb7   : > { %p1182_p5 = scmp.lt.s32.totalorder %s347_s21, %s1180_s20  ;;  %p1183_p6 = scmp.lt.s32.totalorder %s1181_s1, %s1174_s2 }
  0xb8   : > { %p1178_p11 = pneg %p1177_p3 }
  0xb9   : > { %p1184_p4 = por %p1183_p6, %p1182_p5 }
  0xbb   : > { %p1185_p7 = pnand %p1184_p4, %p1178_p11 }
  0xbd   : > { %1188 = shalt.err (!%p1185_p7)
}
  0xbe   : > { %929 = dma.hbm_to_vmem [thread:$0]  (!%p1987_p2), %s1715_s5, 16, %s347_s21, %s1561_s23  }
  0xbf   : > { %p1990_p12 = scmp.ne.s32.totalorder %s1962_s14, 0 }
  0xc0   : > { %s1742_s19 = sand.u32 (!%p1990_p12), 1, %s1355_s28   ;;  %p1991_p6 = scmp.ne.s32.totalorder (!%p1990_p12), %s1977_s15, 0 }
  0xc1   : > { %355 = sbr.rel (%p1990_p12) target bundleno = 864 (0x360), region = 40  ;;  %s1745_s7 = sshll.u32 (!%p1990_p12), %s1742_s19, 3 }
  0xc2   : > { %s358_s22 = scalar_lea.sflag (!%p1990_p12), [#allocation4], %s1742_s19  ;;  %s361_s30 = scalar_lea.vmem (!%p1990_p12), [#allocation3], %s1745_s7 }
  0xc8   : > { %1318 = dma.done.wait (%p1991_p6), %s358_s22, 128  }
  0xc9   : > { %1320 = vsyncadd (%p1991_p6), %s358_s22, 4294967168  ;;  %p1992_p2 = scmp.eq.s32.totalorder %s1488_s12, 0 }
  0xcb   : > { %1322 = dma.done.wait (%p1992_p2), [#allocation7], 32   ;;  %p1993_p9 = pmov %p1992_p2 }
  0xcc   : > { %s374_s14 = sand.u32 1, %s1488_s12   ;;  %s376_s23 = sand.u32 1, %s1343_s25  }
  0xcd   : > { %1324 = vsyncadd (%p1993_p9), [#allocation7], 4294967264  ;;  %s850_s16 = sshll.u32 %s376_s23, 5  ;;  %s375_s5 = scalar_lea.sflag [#allocation10], %s374_s14 }
  0xce   : > { %s1761_s21 = scalar_lea.vmem [#allocation9], %s850_s16  ;;  %p1994_p8 = scmp.ne.s32.totalorder %s1961_s13, 0 }
  0xd0   : > { %1326 = dma.done.wait (%p1994_p8), %s375_s5, 528  }
  0xd1   : > { %1328 = vsyncadd (%p1994_p8), %s375_s5, 4294966768  ;;  %s1767_s15 = scalar_lea.vmem [#allocation11], %s376_s23  ;;  %s421_s8 = scalar_lea.vmem [#allocation12], %s1745_s7 }
  0xd2   : > { %s428_s10 = scalar_lea.vmem [#allocation13], %s1745_s7  ;;  %s1950_s2 = scalar_lea.vmem [#allocation15], %s1745_s7 }
  0xd3   : > { %s1995_s24 = sld [smem:[#allocation21_spill]] }
  0xd9   : > { %p854_p0 = scmp.ne.s32.totalorder %s1995_s24, 0 }
  0xda   : > { %v440_v0 = vld [vmem:[%s361_s30] sm:$0xff] (!%p854_p0)  ;;  %vm443_vm0 = vcmask (!%p854_p0), 261120   ;;  %v855_v11 = vld [vmem:[#allocation6] ss:$0 sm:$0xff] (!%p854_p0)  ;;  %v856_v13 = vld [vmem:[#allocation8] ss:$0 sm:$0xff] (!%p854_p0) }
  0xdb   : > { %439 = sbr.rel (%p854_p0) target bundleno = 533 (0x215), region = 64  ;;  %v444_v1 = vsel (!%p854_p0), %vm443_vm0, %v440_v0, 0.0 }
  0xdc   : > { %445 = vadd.xlane.f32.xlu0 (!%p854_p0), %v444_v1 }
 0x169   : > { %v446_v2 = vpop.xlane.xlu0 %445 }
 0x16a   : > { %v448_v3 = vmul.f32 0.03125, %v446_v2 }
 0x16c   : > { %v449_v4 = vsub.f32 %v440_v0, %v448_v3 }
 0x16e   : > { %v450_v5 = vmul.f32 %v449_v4, %v449_v4 }
 0x170   : > { %v451_v6 = vsel %vm443_vm0, %v450_v5, 0.0 }
 0x171   : > { %452 = vadd.xlane.f32.xlu0 %v451_v6 }
 0x1fe   : > { %v453_v7 = vpop.xlane.xlu0 %452 }
 0x1ff   : > { %v454_v8 = vmul.f32 0.03125, %v453_v7 }
 0x201   : > { %v455_v9 = vadd.f32 1e-05, %v454_v8 }
 0x203   : > { %1041 = vrsqrt.f32 %v455_v9 }
 0x20d   : > { %v1042_v10 = vpop.eup %1041 }
 0x20e   : > { %v457_v12 = vmul.f32 %v1042_v10, %v449_v4 }
 0x210   : > { %v464_v14 = vmul.f32 %v855_v11, %v457_v12 }
 0x212   : > { %v471_v15 = vadd.f32 %v856_v13, %v464_v14 }
 0x214   : > { %472 = vst.msk [vmem:[#allocation2] sm:$0xff] %vm443_vm0, %v471_v15 }
 0x215 PF: > { %v474_v16 = vld [vmem:[%s1761_s21] sm:$0xff]  ;;  %v475_v17 = vld [vmem:[%s1761_s21 + $0x8] sm:$0xff]  ;;  %v476_v18 = vld [vmem:[%s1761_s21 + $0x10] sm:$0xff]  ;;  %v1388_v19 = vmov 0.0|0.0   ;;  %vm1389_vm1 = vmmov 0   ;;  %v1390_v22 = vmov 0.0  }
 0x216   : > { %887 = vmatprep.subr.bf16.mxu0 %v1388_v19  ;;  %v888_v20 = vpack.c.bf16 %v475_v17, %v474_v16  ;;  %v477_v21 = vld [vmem:[%s1761_s21 + $0x18] sm:$0xff]  ;;  %884 = vmatprep.mubr.msk.f32.mxu0 %vm1389_vm1, %v1390_v22  ;;  %vm485_vm2 = vcmask 261120   ;;  %v857_v25 = vld [vmem:[%s1767_s15] ss:$0 sm:$0xff] }
 0x217   : > { %v891_v23 = vpack.c.bf16 %v477_v21, %v476_v18 }
 0x218   : > { %889 = vmatpush3.bf16.msra.mxu0 %v888_v20 }
 0x219   : > { %890 = vmatprep.subr.bf16.mxu0 %v1388_v19 }
 0x21b   : > { %v473_v24 = vld [vmem:[#allocation2] sm:$0xff] }
 0x21c   : > { %892 = vmatpush3.bf16.msra.mxu0 %v891_v23 }
 0x21f   : > { %885 = vmatmul.mubr.msk.f32.vlgmr.msra.gmra.mrb[0].mxu0 %vm485_vm2, %v473_v24 }
 0x2ed   : > { %561 = sbr.rel (%p854_p0) target bundleno = 758 (0x2f6), region = 68 }
 0x2f2   : > { %v555_v26 = vpop.f32.mrb[0].mxu0 }
 0x2f3   : > { %v556_v27 = vadd.f32 %v857_v25, %v555_v26  ;;  %v886_v28 = vpop.f32.mrb[1].mxu0 }
 0x2f5   : > { %562 = vst.msk [vmem:[%s421_s8] sm:$0xff] %vm485_vm2, %v556_v27 }
 0x2f6 PF: > { %s1997_s20 = sld [smem:[#allocation21_spill]] }
 0x2fc   : > { %p860_p1 = scmp.ne.s32.totalorder %s1997_s20, 1 }
 0x2fd   : > { %567 = vst.msk [vmem:[%s428_s10] sm:$0xff] (!%p860_p1), %vm485_vm2, %v556_v27 }
 0x2fe   : > { %566 = sbr.rel (%p860_p1) target bundleno = 773 (0x305), region = 72 }
 0x305 PF: > { %s1998_s1 = sld [smem:[#allocation21_spill]] }
 0x30b   : > { %p861_p10 = scmp.ne.s32.totalorder %s1998_s1, 2 }
 0x30c   : > { %572 = vst.msk [vmem:[%s1950_s2] sm:$0xff] (!%p861_p10), %vm485_vm2, %v556_v27 }
 0x30d   : > { %571 = sbr.rel (%p861_p10) target bundleno = 788 (0x314), region = 76 }
 0x314 PF: > { %s1999_s22 = sld [smem:[#allocation22_spill]]  ;;  %s2000_s5 = sld [smem:[#allocation31_spill]] }
 0x315   : > { %s612_s15 = sshll.u32 %s428_s10, 4  ;;  %s1806_s24 = scalar_lea.sflag [#allocation14], %s374_s14  ;;  %s613_s15 = int_to_ptr.vmem [resolvable:$true] %s612_s15 }
 0x316   : > { %s1189_s13 = scalar_lea.vmem %s613_s15, 128  ;;  %p2001_p3 = scmp.ne.s32.totalorder %s1980_s18, 0 }
 0x317   : > { %p1190_p13 = scmp.ne.s32.totalorder %s613_s15, %s1189_s13  ;;  %s1391_s20 = smov [#allocation13]  }
 0x318   : > { %s1193_s1 = sshll.u32 %s1391_s20, 4  ;;  %s1194_s1 = int_to_ptr.vmem [resolvable:$false] %s1193_s1 }
 0x319   : > { %p1191_p11 = pnand %p1190_p13, %p2001_p3  ;;  %p1196_p4 = scmp.lt.s32.totalorder %s613_s15, %s1194_s1 }
 0x31a   : > { %s1794_s30 = sshll.u32 %s1999_s22, 7  ;;  %s1195_s22 = scalar_lea.vmem %s1194_s1, 256 }
 0x31b   : > { %s1800_s21 = scalar_lea.hbm %s2000_s5, %s1794_s30  ;;  %p1192_p5 = pneg %p1191_p11 }
 0x31c   : > { %p1197_p7 = scmp.lt.s32.totalorder %s1195_s22, %s1189_s13 }
 0x31e   : > { %p1198_p12 = por %p1197_p7, %p1196_p4 }
 0x320   : > { %p1199_p6 = pnand %p1198_p12, %p1192_p5 }
 0x322   : > { %1202 = shalt.err (!%p1199_p6)
}
 0x323   : > { %s1203_s12 = scalar_lea.hbm %s1800_s21, 128  ;;  %s1207_s23 = scalar_lea.hbm %s2000_s5, 256 }
 0x324   : > { %p1204_p2 = scmp.ne.s32.totalorder %s1800_s21, %s1203_s12  ;;  %p1208_p0 = scmp.lt.u32.totalorder %s1800_s21, %s2000_s5 }
 0x325   : > { %p1209_p1 = scmp.lt.u32.totalorder %s1207_s23, %s1203_s12  ;;  %p1211_p13 = scmp.lt.u32.totalorder %s1203_s12, %s1800_s21 }
 0x326   : > { %p1205_p9 = pnand %p1204_p2, %p2001_p3 }
 0x327   : > { %p1210_p10 = por %p1209_p1, %p1208_p0 }
 0x328   : > { %p1206_p8 = pneg %p1205_p9 }
 0x329   : > { %p1212_p11 = por %p1211_p13, %p1210_p10 }
 0x32b   : > { %p1213_p5 = pnand %p1212_p11, %p1206_p8 }
 0x32d   : > { %1216 = shalt.err (!%p1213_p5)
}
 0x32e   : > { %908 = dma.vmem_to_hbm [thread:$0]  (%p2001_p3), %s613_s15, 128, %s1800_s21, %s1806_s24  }
 0x32f   : > { %s2002_s22 = sld [smem:[#allocation30_spill]]  ;;  %s598_s12 = sshll.u32 %s421_s8, 4  ;;  %s1834_s12 = int_to_ptr.vmem [resolvable:$true] %s598_s12 }
 0x330   : > { %s2003_s16 = sld [smem:[#allocation32_spill]]  ;;  %s574_s2 = scalar_lea.sflag [#allocation5], %s1742_s19 }
 0x331   : > { %s1217_s0 = scalar_lea.vmem %s1834_s12, 128  ;;  %s1392_s21 = smov [#allocation12]  }
 0x332   : > { %p1218_p4 = scmp.ne.s32.totalorder %s1834_s12, %s1217_s0  ;;  %s1221_s15 = sshll.u32 %s1392_s21, 4  ;;  %s1222_s15 = int_to_ptr.vmem [resolvable:$false] %s1221_s15 }
 0x333   : > { %s1223_s8 = scalar_lea.vmem %s1222_s15, 256  ;;  %p1224_p6 = scmp.lt.s32.totalorder %s1834_s12, %s1222_s15 }
 0x334   : > { %p1219_p7 = pnand %p1218_p4, %p2001_p3  ;;  %p1225_p2 = scmp.lt.s32.totalorder %s1223_s8, %s1217_s0 }
 0x335   : > { %s1830_s14 = scalar_lea.hbm %s2002_s22, %s1794_s30 }
 0x336   : > { %s1840_s20 = scalar_lea.hbm %s2003_s16, %s1794_s30  ;;  %p1220_p12 = pneg %p1219_p7 }
 0x337   : > { %p1226_p9 = por %p1225_p2, %p1224_p6 }
 0x339   : > { %p1227_p8 = pnand %p1226_p9, %p1220_p12 }
 0x33b   : > { %1230 = shalt.err (!%p1227_p8)
}
 0x33c   : > { %s1231_s19 = scalar_lea.hbm %s1830_s14, 128  ;;  %s1235_s1 = scalar_lea.hbm %s2002_s22, 256 }
 0x33d   : > { %p1232_p0 = scmp.ne.s32.totalorder %s1830_s14, %s1231_s19  ;;  %p1236_p13 = scmp.lt.u32.totalorder %s1830_s14, %s2002_s22 }
 0x33e   : > { %p1237_p11 = scmp.lt.u32.totalorder %s1235_s1, %s1231_s19  ;;  %p1239_p4 = scmp.lt.u32.totalorder %s1231_s19, %s1830_s14 }
 0x33f   : > { %p1233_p1 = pnand %p1232_p0, %p2001_p3 }
 0x340   : > { %p1238_p5 = por %p1237_p11, %p1236_p13 }
 0x341   : > { %p1234_p10 = pneg %p1233_p1 }
 0x342   : > { %p1240_p7 = por %p1239_p4, %p1238_p5 }
 0x344   : > { %p1241_p12 = pnand %p1240_p7, %p1234_p10 }
 0x346   : > { %1244 = shalt.err (!%p1241_p12)
}
 0x347   : > { %907 = dma.vmem_to_hbm [thread:$0]  (%p2001_p3), %s1834_s12, 128, %s1830_s14, %s574_s2  }
 0x348   : > { %s2004_s0 = scalar_lea.vmem [#allocation15], %s1745_s7  ;;  %s1393_s8 = smov [#allocation15]  }
 0x349   : > { %s626_s21 = sshll.u32 %s2004_s0, 4  ;;  %s1249_s19 = sshll.u32 %s1393_s8, 4  ;;  %s627_s21 = int_to_ptr.vmem [resolvable:$true] %s626_s21  ;;  %s1250_s19 = int_to_ptr.vmem [resolvable:$false] %s1249_s19 }
 0x34a   : > { %s1245_s15 = scalar_lea.vmem %s627_s21, 128  ;;  %s1251_s30 = scalar_lea.vmem %s1250_s19, 256 }
 0x34b   : > { %p1246_p6 = scmp.ne.s32.totalorder %s627_s21, %s1245_s15  ;;  %p1252_p8 = scmp.lt.s32.totalorder %s627_s21, %s1250_s19 }
 0x34c   : > { %p1253_p0 = scmp.lt.s32.totalorder %s1251_s30, %s1245_s15 }
 0x34d   : > { %p1247_p2 = pnand %p1246_p6, %p2001_p3 }
 0x34e   : > { %p1254_p1 = por %p1253_p0, %p1252_p8 }
 0x34f   : > { %p1248_p9 = pneg %p1247_p2 }
 0x351   : > { %p1255_p10 = pnand %p1254_p1, %p1248_p9 }
 0x353   : > { %1258 = shalt.err (!%p1255_p10)
}
 0x354   : > { %s1259_s7 = scalar_lea.hbm %s1840_s20, 128  ;;  %s1263_s12 = scalar_lea.hbm %s2003_s16, 256 }
 0x355   : > { %p1260_p13 = scmp.ne.s32.totalorder %s1840_s20, %s1259_s7  ;;  %p1264_p4 = scmp.lt.u32.totalorder %s1840_s20, %s2003_s16 }
 0x356   : > { %p1265_p7 = scmp.lt.u32.totalorder %s1263_s12, %s1259_s7  ;;  %p1267_p6 = scmp.lt.u32.totalorder %s1259_s7, %s1840_s20 }
 0x357   : > { %p1261_p11 = pnand %p1260_p13, %p2001_p3 }
 0x358   : > { %p1266_p12 = por %p1265_p7, %p1264_p4 }
 0x359   : > { %p1262_p5 = pneg %p1261_p11 }
 0x35a   : > { %p1268_p2 = por %p1267_p6, %p1266_p12 }
 0x35c   : > { %p1269_p9 = pnand %p1268_p2, %p1262_p5 }
 0x35e   : > { %1272 = shalt.err (!%p1269_p9)
}
 0x35f   : > { %909 = dma.vmem_to_hbm [thread:$0]  (%p2001_p3), %s627_s21, 128, %s1840_s20, %s1806_s24  }
 0x360 PF: > { %p945_p8 = scmp.ge.s32.totalorder %s1379_s11, 2  ;;  %s638_s10 = sand.u32 1, %s1351_s27  }
 0x361   : > { %p2005_p0 = scmp.ne.s32.totalorder %s1982_s17, 0  ;;  %s639_s23 = scalar_lea.sflag [#allocation5], %s638_s10 }
 0x363   : > { %p931_p1 = pnand %p945_p8, %p2005_p0 }
 0x365   : > { %1330 = dma.done.wait (!%p931_p1), %s639_s23, 128  }
 0x366   : > { %1332 = vsyncadd (!%p931_p1), %s639_s23, 4294967168  ;;  %s2006_s0 = sadd.s32 4294967294, %s1379_s11  }
 0x367   : > { %s647_s15 = sand.u32 1, %s2006_s0  }
 0x368   : > { %s648_s8 = scalar_lea.sflag [#allocation14], %s647_s15 }
 0x369   : > { %1334 = dma.done.wait (!%p931_p1), %s648_s8, 256  }
 0x36a   : > { %1336 = vsyncadd (!%p931_p1), %s648_s8, 4294967040  ;;  %s31_s11 = sadd.s32 1, %s1379_s11   ;;  %s2007_s8 = sld [smem:[#allocation23_spill]] }
 0x36b   : > { %p28_p3 = scmp.ge.s32.totalorder %s31_s11, 8   ;;  %s2008_s18 = sld [smem:[#allocation24_spill]] }
 0x36c   : > { %s2009_s10 = sld [smem:[#allocation25_spill]]  ;;  %s2010_s24 = smov %s1343_s25 }
 0x36d   : > { %s2011_s25 = smov %s1347_s26  ;;  %s2012_s26 = smov %s1656_s6 }
 0x36e   : > { %s2013_s27 = smov %s1355_s28  ;;  %s2014_s28 = smov %s1359_s29 }
 0x36f   : > { %s2015_s29 = smov %s1659_s3  ;;  %s2016_s30 = smov %s1371_s9 }
 0x370   :  { %30 = sbr.rel (!%p28_p3) target bundleno = 22 (0x16), region = 165 }
 0x371   : > { %s2017_s9 = smov %s2008_s18 }
 0x377   :  { %662 = vsyncpa [#allocation4], 1 }
 0x378   :  { %664 = vsyncpa [#allocation4 + $0x1], 1 }
 0x379   :  { %665 = vsyncpa [#allocation7], 1 }
 0x37a   :  { %666 = vsyncpa [#allocation10], 1 }
 0x37b   :  { %668 = vsyncpa [#allocation10 + $0x1], 1 }
 0x37c   :  { %669 = vsyncpa [#allocation5], 1 }
 0x37d   :  { %671 = vsyncpa [#allocation5 + $0x1], 1 }
 0x37e   :  { %672 = vsyncpa [#allocation14], 1 }
 0x37f   :  { %674 = vsyncpa [#allocation14 + $0x1], 1 }

</bundles_post_ra>
